<compile_context>
chip_gen: v7x
topology: tpu7x:2x2x1
jax: 0.10.0
libtpu: 0.0.40
codegen_flags: <defaults>
</compile_context>

<pallas_src>
import jax
import jax.numpy as jnp
from jax.experimental import pallas as pl
from jax.experimental.pallas import tpu as pltpu


def _round_up(x, m):
    return ((x + m - 1) // m) * m


# ----------------------------- Pallas kernel -------------------------------

def _transition_kernel(x_ref, sb_ref, w_ref, o_ref):
    """Fused BN + ReLU + 2x2 avg-pool + 1x1 conv for one row-tile of output pixels.

    x_ref : (tm, 4*Cin_p) f32  -- the 4 members of each pixel's 2x2 pool window, laid
                                  out as 4 lane-aligned channel groups
    sb_ref: (2, Cin_p)    f32  -- row 0: bn_scale/4, row 1: bn_shift/4 (pool folded in)
    w_ref : (Cin_p, Cout_p) bf16 -- 1x1 conv weight
    o_ref : (tm, Cout_p)  f32
    """
    cin_p = w_ref.shape[0]
    s = sb_ref[0:1, :]                         # (1, Cin_p): broadcasts over rows
    b = sb_ref[1:2, :]
    acc = jnp.maximum(x_ref[:, 0:cin_p] * s + b, 0.0)
    for k in range(1, 4):                      # short unrolled VPU window reduction
        xk = x_ref[:, k * cin_p:(k + 1) * cin_p]   # lane-aligned static slice
        acc = acc + jnp.maximum(xk * s + b, 0.0)
    o_ref[...] = jnp.dot(acc.astype(jnp.bfloat16), w_ref[...],
                         preferred_element_type=jnp.float32)


# ----------------------------- tiling helper --------------------------------

def _pick_row_tile(m, cin_p, cout_p, budget_bytes=10 * 1024 * 1024):
    """Row tile from a VMEM budget that fits all generations' default scoped limits,
    preferring tiles that divide m (no ragged tail) with an even grid-step count."""
    per_row = 40 * cin_p + 8 * cout_p          # dbuf x (32*cin) + dbuf out (8*cout) + acc (8*cin)
    fixed = 4 * cin_p * cout_p                 # bf16 weight, double-buffered
    tm = (budget_bytes - fixed) // per_row
    tm = int(max(8, min(tm, 1024)))
    tm -= tm % 8
    if tm >= m:
        if m >= 16 and m % 16 == 0:
            return m // 2                      # 2 grid steps -> both v7x cores get work
        return m                               # block dim == full array dim is always legal
    best = None
    for cand in range(tm, max(7, tm - 256), -8):
        if m % cand == 0:
            if (m // cand) % 2 == 0:
                return cand                    # divides m AND even number of steps
            if best is None:
                best = cand
    return best if best is not None else tm    # ragged tail handled by Pallas masking


# ----------------------------- wrapper --------------------------------------

def transition_block(x_nchw, bn_scale, bn_shift, w):
    """DenseNet TransitionBlock forward.

    x_nchw   : (N, C_in, H, W) float32 (PyTorch layout)
    bn_scale : (C_in,)  = gamma / sqrt(running_var + eps)
    bn_shift : (C_in,)  = beta - running_mean * bn_scale
    w        : (C_in, C_out) 1x1 conv weight (no bias)
    returns  : (N, C_out, H//2, W//2) float32
    """
    n, cin, h, wsp = x_nchw.shape
    cout = w.shape[1]
    ho, wo = h // 2, wsp // 2
    m = n * ho * wo

    if (h % 2) or (wsp % 2):                   # AvgPool2d(2,2,pad=0) drops the last row/col
        x_nchw = x_nchw[:, :, : 2 * ho, : 2 * wo]

    # The ONLY wrapper-side data movement: NCHW -> (N, Ho, Wo, 2, 2, C).  Everything
    # below is a free contiguous split/merge (no extra HBM traffic).
    xt = jnp.transpose(
        x_nchw.astype(jnp.float32).reshape(n, cin, ho, 2, wo, 2),
        (0, 2, 4, 3, 5, 1))

    cin_p = _round_up(cin, 128)
    cout_p = _round_up(cout, 128)
    if cin_p != cin:                           # real DenseNet transitions are already aligned
        xt = jnp.pad(xt, ((0, 0),) * 5 + ((0, cin_p - cin),))
    xw = xt.reshape(m, 4 * cin_p)              # free reshape: pixels x (4 window members * C)

    # Fold the 0.25 pooling factor into BOTH bn scale and shift (ReLU pos.-homogeneous).
    s4 = jnp.pad((bn_scale * 0.25).astype(jnp.float32), (0, cin_p - cin))
    b4 = jnp.pad((bn_shift * 0.25).astype(jnp.float32), (0, cin_p - cin))
    sb = jnp.stack([s4, b4], axis=0)           # (2, Cin_p): single resident side input

    wp = w.astype(jnp.float32)
    if cin_p != cin or cout_p != cout:
        wp = jnp.pad(wp, ((0, cin_p - cin), (0, cout_p - cout)))
    wp = wp.astype(jnp.bfloat16)

    tm = _pick_row_tile(m, cin_p, cout_p)

    out = pl.pallas_call(
        _transition_kernel,
        out_shape=jax.ShapeDtypeStruct((m, cout_p), jnp.float32),
        grid=(pl.cdiv(m, tm),),
        in_specs=[
            pl.BlockSpec((tm, 4 * cin_p), lambda i: (i, 0)),
            pl.BlockSpec((2, cin_p), lambda i: (0, 0)),
            pl.BlockSpec((cin_p, cout_p), lambda i: (0, 0)),
        ],
        out_specs=pl.BlockSpec((tm, cout_p), lambda i: (i, 0)),
        compiler_params=pltpu.CompilerParams(dimension_semantics=("parallel",)),
    )(xw, sb, wp)

    if cout_p != cout:
        out = out[:, :cout]
    out = out.reshape(n, ho, wo, cout)
    # NCHW kept for parity with the PyTorch module.  If the consumer accepts NHWC (or
    # bf16), drop this transpose / emit bf16 from the kernel to save output traffic.
    return jnp.transpose(out, (0, 3, 1, 2))


# ----------------------------- reference (pure JAX) --------------------------

def transition_block_ref(x_nchw, bn_scale, bn_shift, w):
    """Straight-line f32 reference: BN -> ReLU -> 1x1 conv -> AvgPool2d(2,2)."""
    x = jnp.transpose(x_nchw, (0, 2, 3, 1)).astype(jnp.float32)
    y = jnp.maximum(x * bn_scale + bn_shift, 0.0)
    z = jnp.einsum('nhwc,cd->nhwd', y, w)
    n, h, wsp, d = z.shape
    z = z.reshape(n, h // 2, 2, wsp // 2, 2, d).mean(axis=(2, 4))
    return jnp.transpose(z, (0, 3, 1, 2))


# ----------------------------------- main ------------------------------------

if __name__ == "__main__":
    key = jax.random.PRNGKey(0)
    n, cin, h, wsp = 2, 64, 16, 16            # small DenseNet-ish transition shapes
    cout = cin // 2                            # transition halves the channel count

    k1, k2, k3, k4, k5, k6 = jax.random.split(key, 6)
    x = jax.random.normal(k1, (n, cin, h, wsp), jnp.float32)

    # BatchNorm parameters / running stats folded into scale & shift (inference mode).
    gamma = 1.0 + 0.1 * jax.random.normal(k2, (cin,), jnp.float32)
    beta = 0.1 * jax.random.normal(k3, (cin,), jnp.float32)
    running_mean = 0.1 * jax.random.normal(k4, (cin,), jnp.float32)
    running_var = 1.0 + 0.1 * jnp.abs(jax.random.normal(k5, (cin,), jnp.float32))
    eps = 1e-5
    bn_scale = gamma / jnp.sqrt(running_var + eps)
    bn_shift = beta - running_mean * bn_scale

    # 1x1 conv weight (kaiming-uniform-like), stored as (C_in, C_out).
    bound = (2.0 ** 0.5) * (3.0 / cin) ** 0.5
    w = jax.random.uniform(k6, (cin, cout), jnp.float32, -bound, bound)

    out = jax.jit(transition_block)(x, bn_scale, bn_shift, w)
    out = jax.block_until_ready(out)

    assert out.shape == (n, cout, h // 2, wsp // 2), out.shape
    assert bool(jnp.all(jnp.isfinite(out)))

    ref = transition_block_ref(x, bn_scale, bn_shift, w)
    max_err = float(jnp.max(jnp.abs(out - ref)))
    # bf16 MXU operands (f32 accumulation) -> loose tolerance vs the f32 reference.
    assert max_err < 5e-2, f"max abs err {max_err}"

    print("KERNEL_OK")
</pallas_src>

<mosaic_0001>
module attributes {stable_mosaic.version = 11 : i64} {
  func.func @_transition_kernel(%arg0: i32, %arg1: memref<64x512xf32, #tpu.memory_space<vmem>>, %arg2: memref<2x128xf32, #tpu.memory_space<vmem>>, %arg3: memref<128x128xbf16, #tpu.memory_space<vmem>>, %arg4: memref<64x128xf32, #tpu.memory_space<vmem>>) attributes {dimension_semantics = [#tpu.dimension_semantics<parallel>], iteration_bounds = array<i64: 2>, scalar_prefetch = 0 : i64, scratch_operands = 0 : i64, tpu.core_type = #tpu.core_type<tc>, window_params = [{transform_indices = @transform_0, window_bounds = array<i64: 64, 512>}, {pipeline_mode = #tpu.pipeline_mode<synchronous>, transform_indices = @transform_1, window_bounds = array<i64: 2, 128>}, {pipeline_mode = #tpu.pipeline_mode<synchronous>, transform_indices = @transform_2, window_bounds = array<i64: 128, 128>}, {transform_indices = @transform_3, window_bounds = array<i64: 64, 128>}]} {
    %c0 = arith.constant 0 : index
    %c0_0 = arith.constant 0 : index
    %0 = vector.load %arg2[%c0, %c0_0] : memref<2x128xf32, #tpu.memory_space<vmem>>, vector<1x128xf32>
    %c1 = arith.constant 1 : index
    %c0_1 = arith.constant 0 : index
    %1 = vector.load %arg2[%c1, %c0_1] : memref<2x128xf32, #tpu.memory_space<vmem>>, vector<1x128xf32>
    %c0_2 = arith.constant 0 : index
    %c0_3 = arith.constant 0 : index
    %2 = vector.load %arg1[%c0_2, %c0_3] : memref<64x512xf32, #tpu.memory_space<vmem>>, vector<64x128xf32>
    %3 = vector.broadcast %0 : vector<1x128xf32> to vector<64x128xf32>
    %4 = arith.mulf %2, %3 : vector<64x128xf32>
    %5 = vector.broadcast %1 : vector<1x128xf32> to vector<64x128xf32>
    %6 = arith.addf %4, %5 : vector<64x128xf32>
    %cst = arith.constant 0.000000e+00 : f32
    %7 = vector.broadcast %cst : f32 to vector<64x128xf32>
    %8 = arith.maximumf %6, %7 : vector<64x128xf32>
    %c0_4 = arith.constant 0 : index
    %c128 = arith.constant 128 : index
    %9 = vector.load %arg1[%c0_4, %c128] : memref<64x512xf32, #tpu.memory_space<vmem>>, vector<64x128xf32>
    %10 = vector.broadcast %0 : vector<1x128xf32> to vector<64x128xf32>
    %11 = arith.mulf %9, %10 : vector<64x128xf32>
    %12 = vector.broadcast %1 : vector<1x128xf32> to vector<64x128xf32>
    %13 = arith.addf %11, %12 : vector<64x128xf32>
    %cst_5 = arith.constant 0.000000e+00 : f32
    %14 = vector.broadcast %cst_5 : f32 to vector<64x128xf32>
    %15 = arith.maximumf %13, %14 : vector<64x128xf32>
    %16 = arith.addf %8, %15 : vector<64x128xf32>
    %c0_6 = arith.constant 0 : index
    %c256 = arith.constant 256 : index
    %17 = vector.load %arg1[%c0_6, %c256] : memref<64x512xf32, #tpu.memory_space<vmem>>, vector<64x128xf32>
    %18 = vector.broadcast %0 : vector<1x128xf32> to vector<64x128xf32>
    %19 = arith.mulf %17, %18 : vector<64x128xf32>
    %20 = vector.broadcast %1 : vector<1x128xf32> to vector<64x128xf32>
    %21 = arith.addf %19, %20 : vector<64x128xf32>
    %cst_7 = arith.constant 0.000000e+00 : f32
    %22 = vector.broadcast %cst_7 : f32 to vector<64x128xf32>
    %23 = arith.maximumf %21, %22 : vector<64x128xf32>
    %24 = arith.addf %16, %23 : vector<64x128xf32>
    %c0_8 = arith.constant 0 : index
    %c384 = arith.constant 384 : index
    %25 = vector.load %arg1[%c0_8, %c384] : memref<64x512xf32, #tpu.memory_space<vmem>>, vector<64x128xf32>
    %26 = vector.broadcast %0 : vector<1x128xf32> to vector<64x128xf32>
    %27 = arith.mulf %25, %26 : vector<64x128xf32>
    %28 = vector.broadcast %1 : vector<1x128xf32> to vector<64x128xf32>
    %29 = arith.addf %27, %28 : vector<64x128xf32>
    %cst_9 = arith.constant 0.000000e+00 : f32
    %30 = vector.broadcast %cst_9 : f32 to vector<64x128xf32>
    %31 = arith.maximumf %29, %30 : vector<64x128xf32>
    %32 = arith.addf %24, %31 : vector<64x128xf32>
    %33 = arith.truncf %32 : vector<64x128xf32> to vector<64x128xbf16>
    %c0_10 = arith.constant 0 : index
    %c0_11 = arith.constant 0 : index
    %34 = vector.load %arg3[%c0_10, %c0_11] : memref<128x128xbf16, #tpu.memory_space<vmem>>, vector<128x128xbf16>
    %cst_12 = arith.constant dense<0.000000e+00> : vector<64x128xf32>
    %35 = tpu.matmul %33, %34, %cst_12 {dimension_numbers = #tpu.dot_dimension_numbers<[1], [0], [0], [1], [0, 0, 1, 1], [], []>} : vector<64x128xbf16>, vector<128x128xbf16>, vector<64x128xf32> -> vector<64x128xf32>
    %c0_13 = arith.constant 0 : index
    %c0_14 = arith.constant 0 : index
    %36 = vector.load %arg4[%c0_13, %c0_14] : memref<64x128xf32, #tpu.memory_space<vmem>>, vector<64x128xf32>
    tpu.vector_store %arg4[%c0_13, %c0_14], %35 {strides = array<i32>} : memref<64x128xf32, #tpu.memory_space<vmem>>, vector<64x128xf32>,
    return
  }
  func.func @transform_0(%arg0: i32) -> (i32, i32) {
    %c0_i32 = arith.constant 0 : i32
    %c0_i32_0 = arith.constant 0 : i32
    return %arg0, %c0_i32 : i32, i32
  }
  func.func @transform_1(%arg0: i32) -> (i32, i32) {
    %c0_i32 = arith.constant 0 : i32
    %c0_i32_0 = arith.constant 0 : i32
    %c0_i32_1 = arith.constant 0 : i32
    return %c0_i32, %c0_i32_0 : i32, i32
  }
  func.func @transform_2(%arg0: i32) -> (i32, i32) {
    %c0_i32 = arith.constant 0 : i32
    %c0_i32_0 = arith.constant 0 : i32
    %c0_i32_1 = arith.constant 0 : i32
    return %c0_i32, %c0_i32_0 : i32, i32
  }
  func.func @transform_3(%arg0: i32) -> (i32, i32) {
    %c0_i32 = arith.constant 0 : i32
    %c0_i32_0 = arith.constant 0 : i32
    return %arg0, %c0_i32 : i32, i32
  }
}

</mosaic_0001>

<bundles_post_ra>
// kernel: transition_block.1
= control target key start
LH: loop header
LB: loop body
LE: loop exit
PB: predicated region body
PF: predicated region fallthrough
CT: control target
= control target key end

     0   :  { %8 = vsyncpa [#allocation3], 0  ;;  %s1002_s0 = inlined_call_operand.vmem [shape: f32[128,512], index: 0, kind: input, shape index: {}]   ;;  %s1003_s1 = inlined_call_operand.vmem [shape: f32[2,128], index: 1, kind: input, shape index: {}]   ;;  %s1004_s2 = inlined_call_operand.vmem [shape: bf16[128,128], index: 2, kind: input, shape index: {}]   ;;  %s1005_s3 = inlined_call_operand.hbm [shape: f32[128,128], index: 3, kind: output, shape index: {}]  }
   0x1   :  { %10 = vsyncpa [#allocation3 + $0x1], 0  ;;  %s768_s12 = smov 0   ;;  %s770_s13 = smov 0  }
   0x2   :  { %s772_s14 = smov 0   ;;  %s774_s15 = smov 0  }
   0x3 LB: > { %s789_s16 = sadd.s32 4294967295, %s743_s15   ;;  %s555_s17 = sadd.s32 4294967294, %s743_s15   ;;  %s743_s15 = sphi %s774_s15, %s1011_s15   ;;  %s739_s14 = sphi %s772_s14, %s1010_s14   ;;  %s735_s13 = sphi %s770_s13, %s1009_s13   ;;  %s731_s12 = sphi %s768_s12, %s1008_s12  }
   0x4   : > { %s793_s18 = sadd.s32 1, %s743_s15   ;;  %s91_s19 = sadd.s32 1, %s739_s14 }
   0x5   : > { %s88_s20 = ssub.s32 %s743_s15, %s793_s18  ;;  %p101_p0 = scmp.ne.s32.totalorder %s739_s14, %s735_s13 }
   0x6   : > { %p89_p1 = scmp.eq.s32.totalorder %s88_s20, 0  ;;  %p102_p2 = scmp.eq.s32.totalorder %s789_s16, 1 }
   0x7   : > { %p107_p3 = scmp.ne.s32.totalorder %s735_s13, %s731_s12  ;;  %p108_p4 = scmp.eq.s32.totalorder %s555_s17, 1 }
   0x8   : > { %s804_s21 = scalar_select %p89_p1, %s739_s14, %s91_s19  }
   0x9   : > { %p806_p5 = por %p102_p2, %p101_p0  ;;  %p810_p6 = por %p108_p4, %p107_p3 }
   0xa   : > { %p558_p7 = scmp.ge.s32.totalorder %s743_s15, 1  ;;  %p142_p8 = scmp.lt.s32.totalorder %s743_s15, 3 }
   0xc   : > { %p143_p9 = pnand %p558_p7, %p142_p8 }
   0xd   : > { %v673_v0 = vld [vmem:[%s1004_s2] sm:$0xff] (!%p143_p9)   ;;  %s560_s26 = sshll.u32 (!%p143_p9), %s789_s16, 3  ;;  %v674_v1 = vld [vmem:[%s1004_s2 + $0x8] sm:$0xff] (!%p143_p9)   ;;  %v675_v2 = vld [vmem:[%s1004_s2 + $0x10] sm:$0xff] (!%p143_p9)   ;;  %s579_s8 = sshll.u32 (!%p143_p9), %s789_s16, 10 }
   0xe   : > { %146 = sbr.rel (%p143_p9) target bundleno = 292 (0x124), region = 32  ;;  %p168_p10 = scmp.lt.s32.totalorder (!%p143_p9), %s560_s26, 15  ;;  %592 = vmatprep.subr.bf16.mxu0 (!%p143_p9), %v673_v0  ;;  %616 = vmatprep.subr.bf16.mxu1 (!%p143_p9), %v673_v0  ;;  %v676_v3 = vld [vmem:[%s1004_s2 + $0x18] sm:$0xff] (!%p143_p9)   ;;  %v837_v4 = vld [vmem:[%s1003_s1] ss:$0 sm:$0xff] (!%p143_p9)  ;;  %v678_v41 = vld [vmem:[%s1004_s2 + $0x28] sm:$0xff] (!%p143_p9)  }
   0xf   : > { %593 = vmatpush3.bf16.msra.mxu0 (!%p143_p9), %v673_v0  ;;  %624 = vmatpush3.bf16.msra.mxu1 (!%p143_p9), %v673_v0  ;;  %v842_v5 = vld [vmem:[%s1003_s1 + $0x1] ss:$0 sm:$0xff] (!%p143_p9)  ;;  %v679_v61 = vld [vmem:[%s1004_s2 + $0x30] sm:$0xff] (!%p143_p9)   ;;  %s959_s11 = scalar_lea.hbm (!%p143_p9), %s1005_s3, %s579_s8  ;;  %s745_s19 = smov (!%p143_p9), [#allocation2]  }
  0x10   : > { %594 = vmatprep.subr.bf16.mxu0 (!%p143_p9), %v674_v1  ;;  %617 = vmatprep.subr.bf16.mxu1 (!%p143_p9), %v674_v1  ;;  %v677_v21 = vld [vmem:[%s1004_s2 + $0x20] sm:$0xff] (!%p143_p9)   ;;  %s685_s20 = sshll.u32 (!%p143_p9), %s745_s19, 4  ;;  %s686_s20 = int_to_ptr.vmem [resolvable:$false] %s685_s20 }
  0x11   : > { %s687_s24 = scalar_lea.vmem (!%p143_p9), %s686_s20, 2048 }
  0x13   : > { %595 = vmatpush3.bf16.msra.mxu0 (!%p143_p9), %v674_v1  ;;  %625 = vmatpush3.bf16.msra.mxu1 (!%p143_p9), %v674_v1 }
  0x14   : > { %596 = vmatprep.subr.bf16.mxu0 (!%p143_p9), %v675_v2  ;;  %618 = vmatprep.subr.bf16.mxu1 (!%p143_p9), %v675_v2 }
  0x15   : > { %s1013_s26 = smov (!%p168_p10, %s560_s26), 15 }
  0x16   : > { %s578_s4 = sshll.u32 %s1013_s26, 5 }
  0x17   : > { %s829_s7 = scalar_lea.vmem %s1002_s0, %s578_s4  ;;  %597 = vmatpush3.bf16.msra.mxu0 %v675_v2  ;;  %626 = vmatpush3.bf16.msra.mxu1 %v675_v2  ;;  %s164_s4 = sand.u32 1, %s735_s13  }
  0x18   : > { %v178_v6 = vld [vmem:[%s829_s7] sm:$0xff]  ;;  %v218_v9 = vld [vmem:[%s829_s7 + $0x8] sm:$0xff]  ;;  %v258_v14 = vld [vmem:[%s829_s7 + $0x10] sm:$0xff]  ;;  %598 = vmatprep.subr.bf16.mxu0 %v676_v3  ;;  %619 = vmatprep.subr.bf16.mxu1 %v676_v3  ;;  %s559_s5 = sshll.u32 %s164_s4, 6  ;;  %s961_s17 = scalar_lea.sflag [#allocation3], %s164_s4 }
  0x19   : > { %v179_v7 = vld [vmem:[%s829_s7 + $0x20] sm:$0xff]  ;;  %v190_v8 = vmul.f32 %v837_v4, %v178_v6  ;;  %v219_v10 = vld [vmem:[%s829_s7 + $0x28] sm:$0xff]  ;;  %v226_v12 = vmul.f32 %v837_v4, %v218_v9  ;;  %v259_v15 = vld [vmem:[%s829_s7 + $0x30] sm:$0xff]  ;;  %v266_v18 = vmul.f32 %v837_v4, %v258_v14  ;;  %s166_s6 = scalar_lea.vmem [#allocation2], %s559_s5 }
  0x1a   : > { %v191_v11 = vmul.f32 %v837_v4, %v179_v7  ;;  %v227_v13 = vmul.f32 %v837_v4, %v219_v10  ;;  %v298_v16 = vld [vmem:[%s829_s7 + $0x18] sm:$0xff]  ;;  %v267_v19 = vmul.f32 %v837_v4, %v259_v15  ;;  %v182_v25 = vld [vmem:[%s829_s7 + $0x80] sm:$0xff]  ;;  %v222_v35 = vld [vmem:[%s829_s7 + $0x88] sm:$0xff] }
  0x1b   : > { %v202_v17 = vadd.f32 %v842_v5, %v190_v8  ;;  %v299_v20 = vld [vmem:[%s829_s7 + $0x38] sm:$0xff]  ;;  %v234_v23 = vadd.f32 %v842_v5, %v226_v12  ;;  %v274_v27 = vadd.f32 %v842_v5, %v266_v18  ;;  %v306_v29 = vmul.f32 %v837_v4, %v298_v16  ;;  %v183_v34 = vld [vmem:[%s829_s7 + $0xa0] sm:$0xff]  ;;  %599 = vmatpush3.bf16.msra.mxu0 %v676_v3  ;;  %v223_v40 = vld [vmem:[%s829_s7 + $0xa8] sm:$0xff] }
  0x1c   : > { %v203_v22 = vadd.f32 %v842_v5, %v191_v11  ;;  %v235_v24 = vadd.f32 %v842_v5, %v227_v13  ;;  %v275_v28 = vadd.f32 %v842_v5, %v267_v19  ;;  %v307_v33 = vmul.f32 %v837_v4, %v299_v20  ;;  %627 = vmatpush3.bf16.msra.mxu1 %v676_v3  ;;  %v262_v45 = vld [vmem:[%s829_s7 + $0x90] sm:$0xff]  ;;  %v302_v59 = vld [vmem:[%s829_s7 + $0x98] sm:$0xff]  ;;  %v180_v1 = vld [vmem:[%s829_s7 + $0x40] sm:$0xff] }
  0x1d   : > { %v210_v26 = vmax.f32 %v202_v17, 0.0  ;;  %v242_v31 = vmax.f32 %v234_v23, 0.0  ;;  %v282_v36 = vmax.f32 %v274_v27, 0.0  ;;  %v314_v38 = vadd.f32 %v842_v5, %v306_v29  ;;  %600 = vmatprep.subr.bf16.mxu0 %v677_v21  ;;  %620 = vmatprep.subr.bf16.mxu1 %v677_v21  ;;  %v263_v54 = vld [vmem:[%s829_s7 + $0xb0] sm:$0xff]  ;;  %v303_v60 = vld [vmem:[%s829_s7 + $0xb8] sm:$0xff]  ;;  %v181_v12 = vld [vmem:[%s829_s7 + $0x60] sm:$0xff] }
  0x1e   : > { %v211_v30 = vmax.f32 %v203_v22, 0.0  ;;  %v243_v32 = vmax.f32 %v235_v24, 0.0  ;;  %v283_v37 = vmax.f32 %v275_v28, 0.0  ;;  %v194_v39 = vmul.f32 %v837_v4, %v182_v25  ;;  %v220_v17 = vld [vmem:[%s829_s7 + $0x48] sm:$0xff]  ;;  %v680_v19 = vld [vmem:[%s1004_s2 + $0x38] sm:$0xff]   ;;  %v260_v23 = vld [vmem:[%s829_s7 + $0x50] sm:$0xff] }
  0x1f   : > { %v250_v42 = vadd.f32 %v242_v31, %v210_v26  ;;  %v315_v44 = vadd.f32 %v842_v5, %v307_v33  ;;  %v322_v46 = vmax.f32 %v314_v38, 0.0  ;;  %v195_v47 = vmul.f32 %v837_v4, %v183_v34  ;;  %601 = vmatpush3.bf16.msra.mxu0 %v677_v21  ;;  %v221_v18 = vld [vmem:[%s829_s7 + $0x68] sm:$0xff] }
  0x20   : > { %v251_v43 = vadd.f32 %v243_v32, %v211_v30  ;;  %v206_v48 = vadd.f32 %v842_v5, %v194_v39  ;;  %v230_v49 = vmul.f32 %v837_v4, %v222_v35  ;;  %v231_v53 = vmul.f32 %v837_v4, %v223_v40  ;;  %628 = vmatpush3.bf16.msra.mxu1 %v677_v21  ;;  %v261_v32 = vld [vmem:[%s829_s7 + $0x70] sm:$0xff] }
  0x21   : > { %v290_v50 = vadd.f32 %v282_v36, %v250_v42  ;;  %v323_v52 = vmax.f32 %v315_v44, 0.0  ;;  %v207_v55 = vadd.f32 %v842_v5, %v195_v47  ;;  %v270_v58 = vmul.f32 %v837_v4, %v262_v45  ;;  %602 = vmatprep.subr.bf16.mxu0 %v678_v41  ;;  %621 = vmatprep.subr.bf16.mxu1 %v678_v41  ;;  %v300_v36 = vld [vmem:[%s829_s7 + $0x58] sm:$0xff]  ;;  %v184_v42 = vld [vmem:[%s829_s7 + $0xc0] sm:$0xff] }
  0x22   : > { %v291_v51 = vadd.f32 %v283_v37, %v251_v43  ;;  %v214_v56 = vmax.f32 %v206_v48, 0.0  ;;  %v238_v57 = vadd.f32 %v842_v5, %v230_v49  ;;  %v239_v0 = vadd.f32 %v842_v5, %v231_v53  ;;  %v301_v37 = vld [vmem:[%s829_s7 + $0x78] sm:$0xff] }
  0x23   : > { %v330_v62 = vadd.f32 %v322_v46, %v290_v50  ;;  %v215_v2 = vmax.f32 %v207_v55, 0.0  ;;  %v271_v6 = vmul.f32 %v837_v4, %v263_v54  ;;  %v278_v7 = vadd.f32 %v842_v5, %v270_v58  ;;  %603 = vmatpush3.bf16.msra.mxu0 %v678_v41 }
  0x24   : > { %v331_v63 = vadd.f32 %v323_v52, %v291_v51  ;;  %v246_v3 = vmax.f32 %v238_v57, 0.0  ;;  %v247_v9 = vmax.f32 %v239_v0, 0.0  ;;  %v310_v10 = vmul.f32 %v837_v4, %v302_v59  ;;  %629 = vmatpush3.bf16.msra.mxu1 %v678_v41  ;;  %604 = vmatprep.subr.bf16.mxu0 %v679_v61  ;;  %v185_v51 = vld [vmem:[%s829_s7 + $0xe0] sm:$0xff]  ;;  %v224_v52 = vld [vmem:[%s829_s7 + $0xc8] sm:$0xff] }
  0x25   : > { %v311_v11 = vmul.f32 %v837_v4, %v303_v60  ;;  %v279_v14 = vadd.f32 %v842_v5, %v271_v6  ;;  %v286_v15 = vmax.f32 %v278_v7, 0.0  ;;  %v192_v16 = vmul.f32 %v837_v4, %v180_v1  ;;  %622 = vmatprep.subr.bf16.mxu1 %v679_v61  ;;  %v225_v57 = vld [vmem:[%s829_s7 + $0xe8] sm:$0xff] }
  0x26   : > { %v338_v8 = vpack.c.bf16 %v331_v63, %v330_v62  ;;  %v254_v13 = vadd.f32 %v246_v3, %v214_v56  ;;  %v255_v20 = vadd.f32 %v247_v9, %v215_v2  ;;  %v318_v21 = vadd.f32 %v842_v5, %v310_v10  ;;  %v264_v2 = vld [vmem:[%s829_s7 + $0xd0] sm:$0xff]  ;;  %v304_v10 = vld [vmem:[%s829_s7 + $0xd8] sm:$0xff] }
  0x27   : > { %v319_v22 = vadd.f32 %v842_v5, %v311_v11  ;;  %v287_v24 = vmax.f32 %v279_v14, 0.0  ;;  %v193_v26 = vmul.f32 %v837_v4, %v181_v12  ;;  %v204_v27 = vadd.f32 %v842_v5, %v192_v16  ;;  %605 = vmatpush3.bf16.msra.mxu0 %v679_v61  ;;  %v265_v3 = vld [vmem:[%s829_s7 + $0xf0] sm:$0xff] }
  0x28   : > { %608 = vmatprep.mubr.bf16.mxu0 %v338_v8  ;;  %v294_v25 = vadd.f32 %v286_v15, %v254_v13  ;;  %v326_v28 = vmax.f32 %v318_v21, 0.0  ;;  %v228_v30 = vmul.f32 %v837_v4, %v220_v17  ;;  %v229_v31 = vmul.f32 %v837_v4, %v221_v18  ;;  %630 = vmatpush3.bf16.msra.mxu1 %v679_v61  ;;  %v305_v15 = vld [vmem:[%s829_s7 + $0xf8] sm:$0xff]  ;;  %s493_s7 = sshll.u32 %s166_s6, 4  ;;  %s954_s7 = int_to_ptr.vmem [resolvable:$true] %s493_s7 }
  0x29   : > { %v327_v29 = vmax.f32 %v319_v22, 0.0  ;;  %v295_v33 = vadd.f32 %v287_v24, %v255_v20  ;;  %v205_v34 = vadd.f32 %v842_v5, %v193_v26  ;;  %v268_v35 = vmul.f32 %v837_v4, %v260_v23  ;;  %606 = vmatprep.subr.bf16.mxu0 %v680_v19  ;;  %623 = vmatprep.subr.bf16.mxu1 %v680_v19  ;;  %s681_s16 = scalar_lea.vmem %s954_s7, 1024  ;;  %p688_p0 = scmp.lt.s32.totalorder %s954_s7, %s686_s20 }
  0x2a   : > { %v334_v38 = vadd.f32 %v326_v28, %v294_v25  ;;  %v212_v39 = vmax.f32 %v204_v27, 0.0  ;;  %v236_v40 = vadd.f32 %v842_v5, %v228_v30  ;;  %v237_v41 = vadd.f32 %v842_v5, %v229_v31  ;;  %p682_p11 = scmp.ne.s32.totalorder %s954_s7, %s681_s16  ;;  %p689_p1 = scmp.lt.s32.totalorder %s687_s24, %s681_s16 }
  0x2b   : > { %v335_v43 = vadd.f32 %v327_v29, %v295_v33  ;;  %v213_v44 = vmax.f32 %v205_v34, 0.0  ;;  %v269_v45 = vmul.f32 %v837_v4, %v261_v32  ;;  %v276_v46 = vadd.f32 %v842_v5, %v268_v35  ;;  %607 = vmatpush3.bf16.msra.mxu0 %v680_v19 }
  0x2c   : > { %v244_v47 = vmax.f32 %v236_v40, 0.0  ;;  %v245_v48 = vmax.f32 %v237_v41, 0.0  ;;  %v308_v49 = vmul.f32 %v837_v4, %v300_v36  ;;  %v309_v50 = vmul.f32 %v837_v4, %v301_v37  ;;  %631 = vmatpush3.bf16.msra.mxu1 %v680_v19  ;;  %p683_p12 = pnand %p682_p11, %p806_p5  ;;  %p690_p2 = por %p689_p1, %p688_p0 }
  0x2d   : > { %v340_v53 = vpack.c.bf16 %v335_v43, %v334_v38  ;;  %v277_v54 = vadd.f32 %v842_v5, %v269_v45  ;;  %v284_v55 = vmax.f32 %v276_v46, 0.0  ;;  %v196_v56 = vmul.f32 %v837_v4, %v184_v42 }
  0x2e   : > { %v252_v58 = vadd.f32 %v244_v47, %v212_v39  ;;  %v253_v59 = vadd.f32 %v245_v48, %v213_v44  ;;  %v316_v60 = vadd.f32 %v842_v5, %v308_v49  ;;  %v317_v61 = vadd.f32 %v842_v5, %v309_v50  ;;  %p684_p13 = pneg %p683_p12 }
  0x2f   : > { %612 = vmatprep.mubr.bf16.mxu1 %v340_v53  ;;  %v285_v62 = vmax.f32 %v277_v54, 0.0  ;;  %v197_v63 = vmul.f32 %v837_v4, %v185_v51  ;;  %v208_v0 = vadd.f32 %v842_v5, %v196_v56  ;;  %v232_v1 = vmul.f32 %v837_v4, %v224_v52 }
  0x30   : > { %v292_v6 = vadd.f32 %v284_v55, %v252_v58  ;;  %v324_v7 = vmax.f32 %v316_v60, 0.0  ;;  %v325_v8 = vmax.f32 %v317_v61, 0.0  ;;  %v233_v9 = vmul.f32 %v837_v4, %v225_v57  ;;  %p691_p3 = pnand %p690_p2, %p684_p13 }
  0x31   : > { %v293_v11 = vadd.f32 %v285_v62, %v253_v59  ;;  %v209_v12 = vadd.f32 %v842_v5, %v197_v63  ;;  %v216_v13 = vmax.f32 %v208_v0, 0.0  ;;  %v240_v14 = vadd.f32 %v842_v5, %v232_v1 }
  0x32   : > { %v332_v16 = vadd.f32 %v324_v7, %v292_v6  ;;  %v241_v17 = vadd.f32 %v842_v5, %v233_v9  ;;  %v272_v18 = vmul.f32 %v837_v4, %v264_v2  ;;  %v273_v19 = vmul.f32 %v837_v4, %v265_v3 }
  0x33   : > { %v333_v20 = vadd.f32 %v325_v8, %v293_v11  ;;  %v217_v21 = vmax.f32 %v209_v12, 0.0  ;;  %v248_v22 = vmax.f32 %v240_v14, 0.0  ;;  %v312_v23 = vmul.f32 %v837_v4, %v304_v10 }
  0x34   : > { %v249_v24 = vmax.f32 %v241_v17, 0.0  ;;  %v280_v25 = vadd.f32 %v842_v5, %v272_v18  ;;  %v281_v26 = vadd.f32 %v842_v5, %v273_v19  ;;  %v313_v27 = vmul.f32 %v837_v4, %v305_v15 }
  0x35   : > { %v339_v28 = vpack.c.bf16 %v333_v20, %v332_v16  ;;  %v256_v29 = vadd.f32 %v248_v22, %v216_v13  ;;  %v320_v30 = vadd.f32 %v842_v5, %v312_v23 }
  0x36   : > { %v257_v31 = vadd.f32 %v249_v24, %v217_v21  ;;  %v288_v32 = vmax.f32 %v280_v25, 0.0  ;;  %v289_v33 = vmax.f32 %v281_v26, 0.0  ;;  %v321_v34 = vadd.f32 %v842_v5, %v313_v27 }
  0x37   : > { %609 = vmatmul.mubr.bf16.vlgmr.msra.gmra.mrb[0].mxu0 %v339_v28  ;;  %v328_v35 = vmax.f32 %v320_v30, 0.0 }
  0x38   : > { %v296_v36 = vadd.f32 %v288_v32, %v256_v29  ;;  %v297_v37 = vadd.f32 %v289_v33, %v257_v31  ;;  %v329_v38 = vmax.f32 %v321_v34, 0.0 }
  0x3a   : > { %v336_v39 = vadd.f32 %v328_v35, %v296_v36  ;;  %v337_v40 = vadd.f32 %v329_v38, %v297_v37 }
  0x3c   : > { %v341_v41 = vpack.c.bf16 %v337_v40, %v336_v39 }
  0x3e   : > { %613 = vmatmul.mubr.bf16.vlgmr.msra.gmra.mrb[0].mxu1 %v341_v41 }
 0x10a   : > { %v610_v4 = vpop.f32.mrb[0].mxu0 }
 0x10b   : > { %473 = vst [vmem:[%s166_s6 + $0x10] sm:$0xff] %v610_v4  ;;  %v440_v42 = vpop.f32.mrb[1].mxu0 }
 0x10c   : > { %471 = vst [vmem:[%s166_s6] sm:$0xff] %v440_v42  ;;  %v611_v43 = vpop.f32.mrb[2].mxu0 }
 0x10d   : > { %474 = vst [vmem:[%s166_s6 + $0x18] sm:$0xff] %v611_v43  ;;  %v443_v5 = vpop.f32.mrb[3].mxu0 }
 0x10e   : > { %472 = vst [vmem:[%s166_s6 + $0x8] sm:$0xff] %v443_v5 }
 0x111   : > { %v614_v44 = vpop.f32.mrb[0].mxu1 }
 0x112   : > { %477 = vst [vmem:[%s166_s6 + $0x30] sm:$0xff] %v614_v44  ;;  %v456_v45 = vpop.f32.mrb[1].mxu1 }
 0x113   : > { %475 = vst [vmem:[%s166_s6 + $0x20] sm:$0xff] %v456_v45  ;;  %v615_v46 = vpop.f32.mrb[2].mxu1 }
 0x114   : > { %478 = vst [vmem:[%s166_s6 + $0x38] sm:$0xff] %v615_v46  ;;  %v459_v47 = vpop.f32.mrb[3].mxu1 }
 0x115   : > { %476 = vst [vmem:[%s166_s6 + $0x28] sm:$0xff] %v459_v47 }
 0x116   : > { %694 = shalt.err (!%p691_p3)
}
 0x117   : > { %s695_s25 = scalar_lea.hbm %s959_s11, 1024  ;;  %s699_s28 = scalar_lea.hbm %s1005_s3, 2048 }
 0x118   : > { %p696_p4 = scmp.ne.s32.totalorder %s959_s11, %s695_s25  ;;  %p700_p9 = scmp.lt.u32.totalorder %s959_s11, %s1005_s3 }
 0x119   : > { %p701_p10 = scmp.lt.u32.totalorder %s699_s28, %s695_s25  ;;  %p703_p12 = scmp.lt.u32.totalorder %s695_s25, %s959_s11 }
 0x11a   : > { %p697_p7 = pnand %p696_p4, %p806_p5 }
 0x11b   : > { %p702_p11 = por %p701_p10, %p700_p9 }
 0x11c   : > { %p698_p8 = pneg %p697_p7 }
 0x11d   : > { %p704_p13 = por %p703_p12, %p702_p11 }
 0x11f   : > { %p705_p0 = pnand %p704_p13, %p698_p8 }
 0x121   : > { %708 = shalt.err (!%p705_p0)
}
 0x122   : > { %s746_s4 = smov 128   ;;  %s747_s5 = smov 8  }
 0x123   : > { %632 = dma.vmem_to_hbm [thread:$0]  (%p806_p5), %s954_s7, 1024, %s959_s11, %s961_s17, %s746_s4, %s746_s4, %s747_s5  }
 0x124 PF: > { %p638_p1 = scmp.ge.s32.totalorder %s743_s15, 2  ;;  %s508_s6 = sand.u32 1, %s731_s12  }
 0x125   : > { %s509_s8 = scalar_lea.sflag [#allocation3], %s508_s6 }
 0x126   : > { %p635_p2 = pnand %p638_p1, %p810_p6 }
 0x128   : > { %726 = dma.done.wait (!%p635_p2), %s509_s8, 1024  }
 0x129   : > { %728 = vsyncadd (!%p635_p2), %s509_s8, 4294966272  ;;  %p13_p3 = scmp.ge.s32.totalorder %s793_s18, 4   ;;  %s1008_s12 = smov %s735_s13 }
 0x12a   : > { %s1009_s13 = smov %s739_s14  ;;  %s1010_s14 = smov %s804_s21 }
 0x12b   : > { %s1011_s15 = smov %s793_s18  ;;  %15 = sbr.rel (!%p13_p3) target bundleno = 3 (0x3), region = 67 }
 0x132   :  { %514 = vsyncpa [#allocation3], 1 }
 0x133   :  { %516 = vsyncpa [#allocation3 + $0x1], 1 }

</bundles_post_ra>
